<compile_context>
chip_gen: v6e
topology: v6e:2x2x1
jax: 0.10.0
libtpu: 0.0.40
codegen_flags: <defaults>
</compile_context>

<pallas_src>
import functools

import jax
import jax.numpy as jnp
import numpy as np
from jax.experimental import pallas as pl
from jax.experimental.pallas import tpu as pltpu

EPS = 1e-5


def glu_kernel(x_ref, w_ref, mask_ref, s1_ref, t1_ref, s2_ref, t2_ref, o_ref,
               patch_ref, *, rolls, cin, dim):
    """One batch element per grid step (everything lane-dense along H*W).

    x_ref    : (1, cin, HW)         unpadded input, spatially flattened
    w_ref    : (2*dim, ntaps*cin)   conv weight in im2col layout
    mask_ref : (ntaps*cin, HW)      1.0 where the dilated tap is in-bounds
    s1/t1    : (2*dim, 1)           fused conv-bias + BatchNorm2d(2*dim) affine
    s2/t2    : (dim, 1)             BatchNorm2d(dim) affine
    o_ref    : (1, dim, HW)         lane-dense output (already NCHW-flat)
    patch_ref: (ntaps*cin, HW)      VMEM scratch: im2col patch slab
    """
    x = x_ref[0]                                       # (cin, HW)

    # Build the im2col slab: each dilated tap is a static lane rotation of the
    # flat image; the out-of-image halo is zeroed by the precomputed mask, so
    # no padded copy of x ever exists (in VMEM or HBM) and no per-tap
    # slice+reshape relayout is needed.
    for t, r in enumerate(rolls):
        xs = x if r == 0 else pltpu.roll(x, r, axis=1)
        patch_ref[t * cin:(t + 1) * cin, :] = xs
    patch = patch_ref[...] * mask_ref[...]             # (ntaps*cin, HW)

    # Single MXU matmul with the folded contraction K = ntaps*cin.
    acc = jnp.dot(w_ref[...], patch,
                  preferred_element_type=jnp.float32)  # (2*dim, HW), f32

    # conv bias + BatchNorm2d(2*dim), fused as per-channel scale/shift.
    y = acc * s1_ref[...] + t1_ref[...]
    # torch.chunk(x, 2, dim=1): first half of channels = value, second = gate.
    xv = y[:dim, :]
    g = y[dim:, :]
    z = xv * jax.nn.sigmoid(g)
    # BatchNorm2d(dim).
    z = z * s2_ref[...] + t2_ref[...]
    o_ref[0] = z.astype(o_ref.dtype)                   # lane-dense store


def glu_forward(x_nchw, params, *, ksz, dil=5, compute_dtype=jnp.float32):
    """compute_dtype=jnp.bfloat16 halves activation/weight DMA and doubles MXU
    throughput on v6e/v7x (f32 accumulate kept); default f32 for tight tolerance.
    """
    N, C, H, W = x_nchw.shape
    dim = C
    pad = (ksz // 2) * dil
    HW = H * W
    ntaps = ksz * ksz

    # Spatial-on-lanes layout: NCHW -> (N, C, H*W). Reshape only (no transpose,
    # no jnp.pad HBM pass).
    x_flat = x_nchw.reshape(N, C, HW).astype(compute_dtype)

    # Static per-tap lane-roll amounts and in-bounds masks (conv halo handling).
    rolls = []
    mask_rows = []
    for kh in range(ksz):
        for kw in range(ksz):
            dh = kh * dil - pad
            dw = kw * dil - pad
            rolls.append((-(dh * W + dw)) % HW)
            hh = np.arange(H)[:, None] + dh            # (H, 1)
            ww = np.arange(W)[None, :] + dw            # (1, W)
            m = (hh >= 0) & (hh < H) & (ww >= 0) & (ww < W)
            mask_rows.append(m.reshape(HW))
    mask_np = np.repeat(np.stack(mask_rows, 0), C, axis=0).astype(np.float32)
    mask = jnp.asarray(mask_np, dtype=compute_dtype)   # (ntaps*C, HW)

    w2 = params["w_im2col"].astype(compute_dtype)      # (2*dim, ntaps*C)
    s1, t1 = params["s1"], params["t1"]                # (2*dim, 1) f32
    s2, t2 = params["s2"], params["t2"]                # (dim, 1)   f32

    kernel = functools.partial(glu_kernel, rolls=tuple(rolls), cin=C, dim=dim)

    # TODO(synk): for large H*W add a spatial grid axis (with halo) so per-step
    # blocks stay small (v7x: 64 MiB VMEM) and v7x's two TensorCores both get
    # work even when N is 1; at H*W=256 a per-batch grid is sufficient.
    out_flat = pl.pallas_call(
        kernel,
        out_shape=jax.ShapeDtypeStruct((N, dim, HW), x_nchw.dtype),
        grid_spec=pltpu.PrefetchScalarGridSpec(
            num_scalar_prefetch=0,
            grid=(N,),
            in_specs=[
                pl.BlockSpec((1, C, HW), lambda b: (b, 0, 0)),
                pl.BlockSpec((2 * dim, ntaps * C), lambda b: (0, 0)),
                pl.BlockSpec((ntaps * C, HW), lambda b: (0, 0)),
                pl.BlockSpec((2 * dim, 1), lambda b: (0, 0)),
                pl.BlockSpec((2 * dim, 1), lambda b: (0, 0)),
                pl.BlockSpec((dim, 1), lambda b: (0, 0)),
                pl.BlockSpec((dim, 1), lambda b: (0, 0)),
            ],
            out_specs=pl.BlockSpec((1, dim, HW), lambda b: (b, 0, 0)),
            scratch_shapes=[pltpu.VMEM((ntaps * C, HW), compute_dtype)],
        ),
        compiler_params=pltpu.CompilerParams(
            dimension_semantics=("parallel",)),
    )(x_flat, w2, mask, s1, t1, s2, t2)

    # (N, dim, H*W) is already NCHW-flat: final reshape is free, no transpose.
    return out_flat.reshape(N, dim, H, W)


def init_params(key, dim, ksz):
    cout = 2 * dim
    k = jax.random.split(key, 10)
    # Conv2d(dim, 2*dim, ksz) weight/bias in PyTorch OIHW layout.
    w_oihw = 0.1 * jax.random.normal(k[0], (cout, dim, ksz, ksz), jnp.float32)
    b_conv = 0.1 * jax.random.normal(k[1], (cout,), jnp.float32)
    # BatchNorm2d(2*dim): affine + running stats (eval mode).
    g1 = 1.0 + 0.1 * jax.random.normal(k[2], (cout,), jnp.float32)
    b1 = 0.1 * jax.random.normal(k[3], (cout,), jnp.float32)
    m1 = 0.1 * jax.random.normal(k[4], (cout,), jnp.float32)
    v1 = 1.0 + 0.1 * jax.random.uniform(k[5], (cout,), jnp.float32)
    # BatchNorm2d(dim).
    g2 = 1.0 + 0.1 * jax.random.normal(k[6], (dim,), jnp.float32)
    b2 = 0.1 * jax.random.normal(k[7], (dim,), jnp.float32)
    m2 = 0.1 * jax.random.normal(k[8], (dim,), jnp.float32)
    v2 = 1.0 + 0.1 * jax.random.uniform(k[9], (dim,), jnp.float32)

    # Fold conv bias + BN1 into one scale/shift; BN2 into another.
    scale1 = g1 / jnp.sqrt(v1 + EPS)
    shift1 = (b_conv - m1) * scale1 + b1
    scale2 = g2 / jnp.sqrt(v2 + EPS)
    shift2 = -m2 * scale2 + b2

    # OIHW -> (O, kh, kw, I) -> (O, ksz*ksz*I): column index = (kh*ksz+kw)*I + i,
    # matching the im2col patch-slab row ordering built in the kernel.
    w_im2col = jnp.transpose(w_oihw, (0, 2, 3, 1)).reshape(cout, ksz * ksz * dim)

    params = {
        "w_im2col": w_im2col,
        "s1": scale1.reshape(cout, 1),
        "t1": shift1.reshape(cout, 1),
        "s2": scale2.reshape(dim, 1),
        "t2": shift2.reshape(dim, 1),
    }
    raw = (w_oihw, b_conv, g1, b1, m1, v1, g2, b2, m2, v2)
    return params, raw


def glu_ref(x_nchw, raw, *, ksz, dil):
    """Pure-JAX reference mirroring the PyTorch forward (eval-mode BN, p=0 dropout)."""
    (w_oihw, b_conv, g1, b1, m1, v1, g2, b2, m2, v2) = raw
    pad = (ksz // 2) * dil
    y = jax.lax.conv_general_dilated(
        x_nchw, w_oihw, window_strides=(1, 1),
        padding=((pad, pad), (pad, pad)),
        rhs_dilation=(dil, dil),
        dimension_numbers=("NCHW", "OIHW", "NCHW"))
    y = y + b_conv[None, :, None, None]
    y = (y - m1[None, :, None, None]) / jnp.sqrt(v1 + EPS)[None, :, None, None] \
        * g1[None, :, None, None] + b1[None, :, None, None]
    xv, g = jnp.split(y, 2, axis=1)
    z = xv * jax.nn.sigmoid(g)
    z = (z - m2[None, :, None, None]) / jnp.sqrt(v2 + EPS)[None, :, None, None] \
        * g2[None, :, None, None] + b2[None, :, None, None]
    return z


if __name__ == "__main__":
    dim, ksz, dil = 4, 3, 5
    key = jax.random.PRNGKey(0)
    kx, kp = jax.random.split(key)

    x = jax.random.normal(kx, (2, dim, 16, 16), jnp.float32)   # NCHW like PyTorch
    params, raw = init_params(kp, dim, ksz)

    out = glu_forward(x, params, ksz=ksz, dil=dil)             # f32 path
    out = jax.block_until_ready(out)

    ref = glu_ref(x, raw, ksz=ksz, dil=dil)
    np.testing.assert_allclose(np.asarray(out), np.asarray(ref),
                               rtol=1e-4, atol=1e-4)
    print("KERNEL_OK")
</pallas_src>

<mosaic_0001>
module attributes {stable_mosaic.version = 11 : i64} {
  func.func @glu_kernel(%arg0: i32, %arg1: memref<1x4x256xf32, #tpu.memory_space<vmem>>, %arg2: memref<8x36xf32, #tpu.memory_space<vmem>>, %arg3: memref<36x256xf32, #tpu.memory_space<vmem>>, %arg4: memref<8x1xf32, #tpu.memory_space<vmem>>, %arg5: memref<8x1xf32, #tpu.memory_space<vmem>>, %arg6: memref<4x1xf32, #tpu.memory_space<vmem>>, %arg7: memref<4x1xf32, #tpu.memory_space<vmem>>, %arg8: memref<1x4x256xf32, #tpu.memory_space<vmem>>, %arg9: memref<36x256xf32, #tpu.memory_space<vmem>>) attributes {dimension_semantics = [#tpu.dimension_semantics<parallel>], iteration_bounds = array<i64: 2>, scalar_prefetch = 0 : i64, scratch_operands = 1 : i64, tpu.core_type = #tpu.core_type<tc>, window_params = [{transform_indices = @transform_0, window_bounds = array<i64: 1, 4, 256>}, {pipeline_mode = #tpu.pipeline_mode<synchronous>, transform_indices = @transform_1, window_bounds = array<i64: 8, 36>}, {pipeline_mode = #tpu.pipeline_mode<synchronous>, transform_indices = @transform_2, window_bounds = array<i64: 36, 256>}, {pipeline_mode = #tpu.pipeline_mode<synchronous>, transform_indices = @transform_3, window_bounds = array<i64: 8, 1>}, {pipeline_mode = #tpu.pipeline_mode<synchronous>, transform_indices = @transform_4, window_bounds = array<i64: 8, 1>}, {pipeline_mode = #tpu.pipeline_mode<synchronous>, transform_indices = @transform_5, window_bounds = array<i64: 4, 1>}, {pipeline_mode = #tpu.pipeline_mode<synchronous>, transform_indices = @transform_6, window_bounds = array<i64: 4, 1>}, {transform_indices = @transform_7, window_bounds = array<i64: 1, 4, 256>}]} {
    %c0 = arith.constant 0 : index
    %c0_0 = arith.constant 0 : index
    %c0_1 = arith.constant 0 : index
    %0 = vector.load %arg1[%c0, %c0_0, %c0_1] : memref<1x4x256xf32, #tpu.memory_space<vmem>>, vector<1x4x256xf32>
    %1 = vector.shape_cast %0 : vector<1x4x256xf32> to vector<4x256xf32>
    %c85_i32 = arith.constant 85 : i32
    %2 = tpu.dynamic_rotate %1 by %c85_i32 dim 1 : vector<4x256xf32>, i32 -> vector<4x256xf32>
    %c0_2 = arith.constant 0 : index
    %c0_3 = arith.constant 0 : index
    %3 = vector.load %arg9[%c0_2, %c0_3] : memref<36x256xf32, #tpu.memory_space<vmem>>, vector<4x256xf32>
    tpu.vector_store %arg9[%c0_2, %c0_3], %2 {strides = array<i32>} : memref<36x256xf32, #tpu.memory_space<vmem>>, vector<4x256xf32>,
    %c80_i32 = arith.constant 80 : i32
    %4 = tpu.dynamic_rotate %1 by %c80_i32 dim 1 : vector<4x256xf32>, i32 -> vector<4x256xf32>
    %c4 = arith.constant 4 : index
    %c0_4 = arith.constant 0 : index
    %5 = vector.load %arg9[%c4, %c0_4] : memref<36x256xf32, #tpu.memory_space<vmem>>, vector<4x256xf32>
    tpu.vector_store %arg9[%c4, %c0_4], %4 {strides = array<i32>} : memref<36x256xf32, #tpu.memory_space<vmem>>, vector<4x256xf32>,
    %c75_i32 = arith.constant 75 : i32
    %6 = tpu.dynamic_rotate %1 by %c75_i32 dim 1 : vector<4x256xf32>, i32 -> vector<4x256xf32>
    %c8 = arith.constant 8 : index
    %c0_5 = arith.constant 0 : index
    %7 = vector.load %arg9[%c8, %c0_5] : memref<36x256xf32, #tpu.memory_space<vmem>>, vector<4x256xf32>
    tpu.vector_store %arg9[%c8, %c0_5], %6 {strides = array<i32>} : memref<36x256xf32, #tpu.memory_space<vmem>>, vector<4x256xf32>,
    %c5_i32 = arith.constant 5 : i32
    %8 = tpu.dynamic_rotate %1 by %c5_i32 dim 1 : vector<4x256xf32>, i32 -> vector<4x256xf32>
    %c12 = arith.constant 12 : index
    %c0_6 = arith.constant 0 : index
    %9 = vector.load %arg9[%c12, %c0_6] : memref<36x256xf32, #tpu.memory_space<vmem>>, vector<4x256xf32>
    tpu.vector_store %arg9[%c12, %c0_6], %8 {strides = array<i32>} : memref<36x256xf32, #tpu.memory_space<vmem>>, vector<4x256xf32>,
    %c16 = arith.constant 16 : index
    %c0_7 = arith.constant 0 : index
    %10 = vector.load %arg9[%c16, %c0_7] : memref<36x256xf32, #tpu.memory_space<vmem>>, vector<4x256xf32>
    tpu.vector_store %arg9[%c16, %c0_7], %1 {strides = array<i32>} : memref<36x256xf32, #tpu.memory_space<vmem>>, vector<4x256xf32>,
    %c251_i32 = arith.constant 251 : i32
    %11 = tpu.dynamic_rotate %1 by %c251_i32 dim 1 : vector<4x256xf32>, i32 -> vector<4x256xf32>
    %c20 = arith.constant 20 : index
    %c0_8 = arith.constant 0 : index
    %12 = vector.load %arg9[%c20, %c0_8] : memref<36x256xf32, #tpu.memory_space<vmem>>, vector<4x256xf32>
    tpu.vector_store %arg9[%c20, %c0_8], %11 {strides = array<i32>} : memref<36x256xf32, #tpu.memory_space<vmem>>, vector<4x256xf32>,
    %c181_i32 = arith.constant 181 : i32
    %13 = tpu.dynamic_rotate %1 by %c181_i32 dim 1 : vector<4x256xf32>, i32 -> vector<4x256xf32>
    %c24 = arith.constant 24 : index
    %c0_9 = arith.constant 0 : index
    %14 = vector.load %arg9[%c24, %c0_9] : memref<36x256xf32, #tpu.memory_space<vmem>>, vector<4x256xf32>
    tpu.vector_store %arg9[%c24, %c0_9], %13 {strides = array<i32>} : memref<36x256xf32, #tpu.memory_space<vmem>>, vector<4x256xf32>,
    %c176_i32 = arith.constant 176 : i32
    %15 = tpu.dynamic_rotate %1 by %c176_i32 dim 1 : vector<4x256xf32>, i32 -> vector<4x256xf32>
    %c28 = arith.constant 28 : index
    %c0_10 = arith.constant 0 : index
    %16 = vector.load %arg9[%c28, %c0_10] : memref<36x256xf32, #tpu.memory_space<vmem>>, vector<4x256xf32>
    tpu.vector_store %arg9[%c28, %c0_10], %15 {strides = array<i32>} : memref<36x256xf32, #tpu.memory_space<vmem>>, vector<4x256xf32>,
    %c171_i32 = arith.constant 171 : i32
    %17 = tpu.dynamic_rotate %1 by %c171_i32 dim 1 : vector<4x256xf32>, i32 -> vector<4x256xf32>
    %c32 = arith.constant 32 : index
    %c0_11 = arith.constant 0 : index
    %18 = vector.load %arg9[%c32, %c0_11] : memref<36x256xf32, #tpu.memory_space<vmem>>, vector<4x256xf32>
    tpu.vector_store %arg9[%c32, %c0_11], %17 {strides = array<i32>} : memref<36x256xf32, #tpu.memory_space<vmem>>, vector<4x256xf32>,
    %c0_12 = arith.constant 0 : index
    %c0_13 = arith.constant 0 : index
    %19 = vector.load %arg9[%c0_12, %c0_13] : memref<36x256xf32, #tpu.memory_space<vmem>>, vector<36x256xf32>
    %c0_14 = arith.constant 0 : index
    %c0_15 = arith.constant 0 : index
    %20 = vector.load %arg3[%c0_14, %c0_15] : memref<36x256xf32, #tpu.memory_space<vmem>>, vector<36x256xf32>
    %21 = arith.mulf %19, %20 : vector<36x256xf32>
    %c0_16 = arith.constant 0 : index
    %c0_17 = arith.constant 0 : index
    %22 = vector.load %arg2[%c0_16, %c0_17] : memref<8x36xf32, #tpu.memory_space<vmem>>, vector<8x36xf32>
    %cst = arith.constant dense<0.000000e+00> : vector<8x256xf32>
    %23 = tpu.matmul %22, %21, %cst {dimension_numbers = #tpu.dot_dimension_numbers<[1], [0], [0], [1], [0, 0, 1, 1], [], []>} : vector<8x36xf32>, vector<36x256xf32>, vector<8x256xf32> -> vector<8x256xf32>
    %c0_18 = arith.constant 0 : index
    %c0_19 = arith.constant 0 : index
    %24 = vector.load %arg4[%c0_18, %c0_19] : memref<8x1xf32, #tpu.memory_space<vmem>>, vector<8x1xf32>
    %25 = vector.broadcast %24 : vector<8x1xf32> to vector<8x256xf32>
    %26 = arith.mulf %23, %25 : vector<8x256xf32>
    %c0_20 = arith.constant 0 : index
    %c0_21 = arith.constant 0 : index
    %27 = vector.load %arg5[%c0_20, %c0_21] : memref<8x1xf32, #tpu.memory_space<vmem>>, vector<8x1xf32>
    %28 = vector.broadcast %27 : vector<8x1xf32> to vector<8x256xf32>
    %29 = arith.addf %26, %28 : vector<8x256xf32>
    %30 = vector.extract_strided_slice %29 {offsets = [0, 0], sizes = [4, 256], strides = [1, 1]} : vector<8x256xf32> to vector<4x256xf32>
    %31 = vector.extract_strided_slice %29 {offsets = [4, 0], sizes = [4, 256], strides = [1, 1]} : vector<8x256xf32> to vector<4x256xf32>
    %32 = arith.negf %31 : vector<4x256xf32>
    %33 = math.exp %32 : vector<4x256xf32>
    %cst_22 = arith.constant 1.000000e+00 : f32
    %34 = vector.broadcast %cst_22 : f32 to vector<4x256xf32>
    %35 = arith.addf %34, %33 : vector<4x256xf32>
    %36 = arith.divf %34, %35 : vector<4x256xf32>
    %37 = arith.mulf %30, %36 : vector<4x256xf32>
    %c0_23 = arith.constant 0 : index
    %c0_24 = arith.constant 0 : index
    %38 = vector.load %arg6[%c0_23, %c0_24] : memref<4x1xf32, #tpu.memory_space<vmem>>, vector<4x1xf32>
    %39 = vector.broadcast %38 : vector<4x1xf32> to vector<4x256xf32>
    %40 = arith.mulf %37, %39 : vector<4x256xf32>
    %c0_25 = arith.constant 0 : index
    %c0_26 = arith.constant 0 : index
    %41 = vector.load %arg7[%c0_25, %c0_26] : memref<4x1xf32, #tpu.memory_space<vmem>>, vector<4x1xf32>
    %42 = vector.broadcast %41 : vector<4x1xf32> to vector<4x256xf32>
    %43 = arith.addf %40, %42 : vector<4x256xf32>
    %c0_27 = arith.constant 0 : index
    %c0_28 = arith.constant 0 : index
    %c0_29 = arith.constant 0 : index
    %44 = vector.load %arg8[%c0_27, %c0_28, %c0_29] : memref<1x4x256xf32, #tpu.memory_space<vmem>>, vector<1x4x256xf32>
    %45 = vector.shape_cast %44 : vector<1x4x256xf32> to vector<4x256xf32>
    %46 = vector.shape_cast %43 : vector<4x256xf32> to vector<1x4x256xf32>
    tpu.vector_store %arg8[%c0_27, %c0_28, %c0_29], %46 {strides = array<i32>} : memref<1x4x256xf32, #tpu.memory_space<vmem>>, vector<1x4x256xf32>,
    return
  }
  func.func @transform_0(%arg0: i32) -> (i32, i32, i32) {
    %c0_i32 = arith.constant 0 : i32
    %c0_i32_0 = arith.constant 0 : i32
    %c0_i32_1 = arith.constant 0 : i32
    return %arg0, %c0_i32, %c0_i32_0 : i32, i32, i32
  }
  func.func @transform_1(%arg0: i32) -> (i32, i32) {
    %c0_i32 = arith.constant 0 : i32
    %c0_i32_0 = arith.constant 0 : i32
    %c0_i32_1 = arith.constant 0 : i32
    return %c0_i32, %c0_i32_0 : i32, i32
  }
  func.func @transform_2(%arg0: i32) -> (i32, i32) {
    %c0_i32 = arith.constant 0 : i32
    %c0_i32_0 = arith.constant 0 : i32
    %c0_i32_1 = arith.constant 0 : i32
    return %c0_i32, %c0_i32_0 : i32, i32
  }
  func.func @transform_3(%arg0: i32) -> (i32, i32) {
    %c0_i32 = arith.constant 0 : i32
    %c0_i32_0 = arith.constant 0 : i32
    %c0_i32_1 = arith.constant 0 : i32
    return %c0_i32, %c0_i32_0 : i32, i32
  }
  func.func @transform_4(%arg0: i32) -> (i32, i32) {
    %c0_i32 = arith.constant 0 : i32
    %c0_i32_0 = arith.constant 0 : i32
    %c0_i32_1 = arith.constant 0 : i32
    return %c0_i32, %c0_i32_0 : i32, i32
  }
  func.func @transform_5(%arg0: i32) -> (i32, i32) {
    %c0_i32 = arith.constant 0 : i32
    %c0_i32_0 = arith.constant 0 : i32
    %c0_i32_1 = arith.constant 0 : i32
    return %c0_i32, %c0_i32_0 : i32, i32
  }
  func.func @transform_6(%arg0: i32) -> (i32, i32) {
    %c0_i32 = arith.constant 0 : i32
    %c0_i32_0 = arith.constant 0 : i32
    %c0_i32_1 = arith.constant 0 : i32
    return %c0_i32, %c0_i32_0 : i32, i32
  }
  func.func @transform_7(%arg0: i32) -> (i32, i32, i32) {
    %c0_i32 = arith.constant 0 : i32
    %c0_i32_0 = arith.constant 0 : i32
    %c0_i32_1 = arith.constant 0 : i32
    return %arg0, %c0_i32, %c0_i32_0 : i32, i32, i32
  }
}

</mosaic_0001>

<bundles_post_ra>
// kernel: tpu_custom_call.1
= control target key start
LH: loop header
LB: loop body
LE: loop exit
PB: predicated region body
PF: predicated region fallthrough
CT: control target
= control target key end

     0   :  { %12 = vsyncpa [#allocation4], 0  ;;  %s1030_s0 = inlined_call_operand.vmem [shape: f32[2,4,256], index: 0, kind: input, shape index: {}]   ;;  %s1031_s1 = inlined_call_operand.vmem [shape: f32[8,36], index: 1, kind: input, shape index: {}]   ;;  %s1032_s2 = inlined_call_operand.hbm [shape: f32[36,256], index: 2, kind: input, shape index: {}]   ;;  %s1033_s3 = inlined_call_operand.vmem [shape: f32[8,1], index: 3, kind: input, shape index: {}]   ;;  %s1034_s4 = inlined_call_operand.vmem [shape: f32[8,1], index: 4, kind: input, shape index: {}]   ;;  %s1035_s5 = inlined_call_operand.vmem [shape: f32[4,1], index: 5, kind: input, shape index: {}]   ;;  %s1036_s6 = inlined_call_operand.vmem [shape: f32[4,1], index: 6, kind: input, shape index: {}]   ;;  %s1037_s7 = inlined_call_operand.hbm [shape: f32[2,4,256], index: 7, kind: output, shape index: {}]  }
   0x1   :  { %13 = vsyncpa [#allocation5], 0 }
   0x2   :  { %15 = vsyncpa [#allocation5 + $0x1], 0  ;;  %s892_s24 = smov 0   ;;  %s894_s25 = smov 0  }
   0x3   :  { %s896_s26 = smov 0   ;;  %s898_s27 = smov 0  }
   0x4 LB: > { %s913_s28 = sadd.s32 4294967295, %s836_s27   ;;  %s652_s29 = sadd.s32 4294967294, %s836_s27   ;;  %s836_s27 = sphi %s898_s27, %s1045_s27   ;;  %s832_s26 = sphi %s896_s26, %s1044_s26   ;;  %s828_s25 = sphi %s894_s25, %s1043_s25   ;;  %s824_s24 = sphi %s892_s24, %s1042_s24  }
   0x5   : > { %s917_s30 = sadd.s32 1, %s836_s27   ;;  %s180_s8 = sadd.s32 1, %s832_s26 }
   0x6   : > { %s177_s9 = ssub.s32 %s836_s27, %s917_s30  ;;  %p190_p0 = scmp.ne.s32.totalorder %s832_s26, %s828_s25 }
   0x7   : > { %p178_p1 = scmp.eq.s32.totalorder %s177_s9, 0  ;;  %p191_p2 = scmp.eq.s32.totalorder %s913_s28, 1 }
   0x8   : > { %p196_p3 = scmp.ne.s32.totalorder %s828_s25, %s824_s24  ;;  %p197_p4 = scmp.eq.s32.totalorder %s652_s29, 1 }
   0x9   : > { %s928_s10 = scalar_select %p178_p1, %s832_s26, %s180_s8  }
   0xa   : > { %p930_p5 = por %p191_p2, %p190_p0  ;;  %p934_p6 = por %p197_p4, %p196_p3 }
   0xb   : > { %p653_p7 = scmp.ge.s32.totalorder %s836_s27, 1  ;;  %p204_p8 = scmp.lt.s32.totalorder %s836_s27, 3 }
   0xc   : > { %s1039_s12 = scalar_select %p934_p6, 1, 0 }
   0xd   : > { %p687_p9 = scmp.eq.s32.totalorder %s913_s28, 0  ;;  %p941_p10 = pnand %p653_p7, %p204_p8 }
   0xe   : > { %s838_s14 = smov [#allocation3]  }
   0xf   : > { %s219_s15 = sshll.u32 %s838_s14, 4  ;;  %p679_p11 = pneg %p941_p10  ;;  %s220_s15 = int_to_ptr.vmem [resolvable:$true] %s219_s15 }
  0x10   : > { %s757_s16 = scalar_lea.vmem %s220_s15, 1280  ;;  %p765_p3 = scmp.lt.s32.totalorder %s220_s15, %s220_s15 }
  0x11   : > { %p680_p12 = pnand %p687_p9, %p679_p11  ;;  %p758_p0 = scmp.ne.s32.totalorder %s220_s15, %s757_s16 }
  0x12   : > { %p766_p4 = scmp.lt.s32.totalorder %s757_s16, %s757_s16 }
  0x13   : > { %p748_p13 = pneg %p680_p12 }
  0x14   : > { %p767_p6 = por %p766_p4, %p765_p3 }
  0x15   : > { %p760_p1 = pnand %p758_p0, %p748_p13 }
  0x17   : > { %p761_p2 = pneg %p760_p1 }
  0x19   : > { %p768_p7 = pnand %p767_p6, %p761_p2 }
  0x1b   : > { %771 = shalt.err (!%p768_p7)
}
  0x1c   : > { %s839_s17 = smov 256   ;;  %s840_s18 = smov 16  }
  0x1d   : > { %682 = dma.hbm_to_vmem [thread:$0]  (!%p680_p12), %s1032_s2, 1280, %s220_s15, [#allocation4], %s839_s17, %s839_s17, %s840_s18  }
  0x1e   : > { %255 = sbr.rel (%p941_p10) target bundleno = 453 (0x1c5), region = 48 }
  0x23   : > { %815 = dma.done.wait (%p687_p9), [#allocation4], 1280  }
  0x24   : > { %817 = vsyncadd (%p687_p9), [#allocation4], 4294966016  ;;  %p287_p8 = scmp.lt.s32.totalorder %s913_s28, 1  ;;  %s841_s9 = smov 43   ;;  %v848_v2 = vmov 0.0   ;;  %v850_v3 = vmov 0   ;;  %v300_v8 = vlaneseq }
  0x25   : > { %s842_s13 = smov 48   ;;  %s843_s14 = smov 123   ;;  %502 = vmatprep.mubr.f32.mxu0 %v848_v2  ;;  %735 = vset.pattern.permute.xlu0 %v850_v3  ;;  %v509_v4 = vld [vmem:[%s1033_s3] sm:$0xff]  ;;  %v415_v26 = vld [vmem:[#allocation3 + $0x48] sm:$0xf]  ;;  %vm431_vm4 = vcmask 1043456  }
  0x26   : > { %s288_s21 = scalar_select %p287_p8, %s913_s28, 1  ;;  %736 = vset.pattern.permute.xlu1 %v850_v3  ;;  %v517_v5 = vld [vmem:[%s1034_s4] sm:$0xff]  ;;  %v975_v9 = vand.u32 127, %v300_v8  ;;  %v414_v27 = vld [vmem:[#allocation3 + $0x40] sm:$0xf]  ;;  %v413_v42 = vld [vmem:[#allocation3 + $0x38] sm:$0xff] }
  0x27   : > { %s844_s15 = smov 53   ;;  %s845_s16 = smov 5   ;;  %v553_v6 = vld [vmem:[%s1036_s6] sm:$0xf]  ;;  %v411_v46 = vld [vmem:[#allocation3 + $0x28] sm:$0xff]  ;;  %v410_v57 = vld [vmem:[#allocation3 + $0x20] sm:$0xff] }
  0x28   : > { %s671_s22 = sshll.u32 %s288_s21, 3  ;;  %s846_s17 = smov 80   ;;  %v545_v7 = vld [vmem:[%s1035_s5] sm:$0xf]  ;;  %vm391_vm0 = vcmp.lt.s32.totalorder %v975_v9, 43  ;;  %vm352_vm1 = vcmp.lt.s32.totalorder %v975_v9, 123 }
  0x29   : > { %s291_s8 = scalar_lea.vmem %s1030_s0, %s671_s22  ;;  %s847_s18 = smov 75   ;;  %vm376_vm2 = vcmp.lt.s32.totalorder %v975_v9, 48  ;;  %vm367_vm3 = vcmp.lt.s32.totalorder %v975_v9, 53  ;;  %vm335_vm5 = vcmp.lt.s32.totalorder %v975_v9, 5  ;;  %vm311_vm6 = vcmp.lt.s32.totalorder %v975_v9, 80  ;;  %v412_v43 = vld [vmem:[#allocation3 + $0x30] sm:$0xff] }
  0x2a   : > { %v292_v0 = vld [vmem:[%s291_s8] sm:$0xff]  ;;  %s849_s19 = smov 85   ;;  %vm326_vm7 = vcmp.lt.s32.totalorder %v975_v9, 75  ;;  %vm302_vm8 = vcmp.lt.s32.totalorder %v975_v9, 85  ;;  %vm427_vm9 = vcmask 293888  }
  0x2b   : > { %387 = vrot.lane.b32.xlu1 %v292_v0, %s841_s9  ;;  %346 = vst [vmem:[#allocation2 + $0x48] sm:$0xf] %v292_v0  ;;  %372 = vrot.lane.b32.xlu0 %v292_v0, %s842_s13  ;;  %v294_v1 = vcombine.high %v292_v0, %v292_v0 }
  0x2d   : > { %347 = vst [vmem:[#allocation2 + $0x28] sm:$0xf] %v294_v1 }
  0x2f   : > { %348 = vrot.lane.b32.xlu0 %v292_v0, %s843_s14  ;;  %389 = vrot.lane.b32.xlu1 %v294_v1, %s841_s9  ;;  %s851_s9 = smov [#allocation6]  }
  0x33   : > { %350 = vrot.lane.b32.xlu1 %v294_v1, %s843_s14  ;;  %374 = vrot.lane.b32.xlu0 %v294_v1, %s842_s13  ;;  %s776_s13 = sshll.u32 %s851_s9, 4  ;;  %s777_s13 = int_to_ptr.vmem [resolvable:$false] %s776_s13 }
  0x37   : > { %365 = vrot.lane.b32.xlu1 %v294_v1, %s844_s15  ;;  %363 = vrot.lane.b32.xlu0 %v292_v0, %s844_s15 }
  0x3b   : > { %333 = vrot.lane.b32.xlu1 %v294_v1, %s845_s16  ;;  %331 = vrot.lane.b32.xlu0 %v292_v0, %s845_s16  ;;  %s284_s16 = sand.u32 1, %s828_s25  }
  0x3c   : > { %s567_s29 = scalar_lea.sflag [#allocation5], %s284_s16 }
  0x3f   : > { %309 = vrot.lane.b32.xlu1 %v294_v1, %s846_s17  ;;  %307 = vrot.lane.b32.xlu0 %v292_v0, %s846_s17  ;;  %s658_s17 = sshll.u32 %s284_s16, 3 }
  0x43   : > { %324 = vrot.lane.b32.xlu1 %v294_v1, %s847_s18  ;;  %322 = vrot.lane.b32.xlu0 %v292_v0, %s847_s18  ;;  %s672_s18 = sshll.u32 %s913_s28, 7  ;;  %s778_s28 = scalar_lea.vmem %s777_s13, 256 }
  0x44   : > { %s579_s23 = scalar_lea.hbm %s1037_s7, %s672_s18 }
  0x47   : > { %298 = vrot.lane.b32.xlu1 %v294_v1, %s849_s19  ;;  %296 = vrot.lane.b32.xlu0 %v292_v0, %s849_s19  ;;  %s286_s19 = scalar_lea.vmem [#allocation6], %s658_s17 }
  0x48   : > { %s581_s20 = sshll.u32 %s286_s19, 4  ;;  %s582_s20 = int_to_ptr.vmem [resolvable:$true] %s581_s20 }
  0x49   : > { %s772_s8 = scalar_lea.vmem %s582_s20, 128  ;;  %p779_p11 = scmp.lt.s32.totalorder %s582_s20, %s777_s13 }
  0x4a   : > { %p773_p6 = scmp.ne.s32.totalorder %s582_s20, %s772_s8  ;;  %p780_p12 = scmp.lt.s32.totalorder %s778_s28, %s772_s8 }
  0x4b   : > { %512 = vperm.xlu0 %735, %v509_v4   ;;  %520 = vperm.xlu1 %736, %v517_v5   ;;  %v409_v4 = vld [vmem:[#allocation3 + $0x18] sm:$0xff]  ;;  %v408_v5 = vld [vmem:[#allocation3 + $0x10] sm:$0xff] }
  0x4c   : > { %p774_p9 = pnand %p773_p6, %p930_p5  ;;  %p781_p13 = por %p780_p12, %p779_p11 }
  0x4e   : > { %p775_p10 = pneg %p774_p9 }
  0x4f   : > { %556 = vperm.xlu0 %735, %v553_v6   ;;  %548 = vperm.xlu1 %736, %v545_v7  }
  0x50   : > { %p782_p0 = pnand %p781_p13, %p775_p10 }
  0x9d   : > { %v388_v10 = vpop.permute.xlu1 %387  ;;  %v373_v11 = vpop.permute.xlu0 %372 }
  0xa1   : > { %v349_v12 = vpop.permute.xlu0 %348  ;;  %v390_v13 = vpop.permute.xlu1 %389 }
  0xa2   : > { %v392_v14 = vsel %vm391_vm0, %v388_v10, %v390_v13  ;;  %v393_v15 = vsel %vm391_vm0, %v390_v13, %v388_v10 }
  0xa3   : > { %394 = vst [vmem:[#allocation2 + $0x40] sm:$0xf] %v392_v14  ;;  %395 = vst [vmem:[#allocation2 + $0x38] sm:$0xf] %v393_v15 }
  0xa5   : > { %v351_v16 = vpop.permute.xlu1 %350  ;;  %v375_v17 = vpop.permute.xlu0 %374 }
  0xa6   : > { %v353_v18 = vsel %vm352_vm1, %v349_v12, %v351_v16  ;;  %v354_v19 = vsel %vm352_vm1, %v351_v16, %v349_v12  ;;  %v377_v20 = vsel %vm376_vm2, %v373_v11, %v375_v17  ;;  %v378_v21 = vsel %vm376_vm2, %v375_v17, %v373_v11  ;;  %v407_v11 = vld [vmem:[#allocation3 + $0x8] sm:$0xff]  ;;  %v406_v12 = vld [vmem:[#allocation3] sm:$0xff]  ;;  %v426_v16 = vld [vmem:[%s1031_s1] sm:$0xff] }
  0xa7   : > { %v357_v22 = vrot.slane %v353_v18, 4  ;;  %v358_v23 = vrot.slane %v354_v19, 4  ;;  %v381_v24 = vrot.slane %v377_v20, 4  ;;  %v382_v25 = vrot.slane %v378_v21, 4 }
  0xa9   : > { %361 = vst [vmem:[#allocation2 + $0x48] sm:$0xf0] %v357_v22  ;;  %362 = vst [vmem:[#allocation2 + $0x28] sm:$0xf0] %v358_v23  ;;  %v366_v28 = vpop.permute.xlu1 %365  ;;  %v364_v29 = vpop.permute.xlu0 %363 }
  0xaa   : > { %385 = vst [vmem:[#allocation2 + $0x8] sm:$0xf0] %v381_v24  ;;  %386 = vst [vmem:[#allocation2 + $0x20] sm:$0xf0] %v382_v25  ;;  %v368_v30 = vsel %vm367_vm3, %v364_v29, %v366_v28  ;;  %v369_v31 = vsel %vm367_vm3, %v366_v28, %v364_v29  ;;  %v405_v32 = vld [vmem:[#allocation2 + $0x38] sm:$0xf] }
  0xab   : > { %v404_v33 = vld [vmem:[#allocation2 + $0x40] sm:$0xf]  ;;  %370 = vst [vmem:[#allocation2 + $0x8] sm:$0xf] %v368_v30  ;;  %371 = vst [vmem:[#allocation2 + $0x20] sm:$0xf] %v369_v31  ;;  %v425_v34 = vmul.f32 %v415_v26, %v405_v32 }
  0xac   : > { %v424_v35 = vmul.f32 %v414_v27, %v404_v33 }
  0xad   : > { %661 = vmatprep.subr.msk.mxu0 %vm431_vm4, %v425_v34  ;;  %v334_v36 = vpop.permute.xlu1 %333  ;;  %v332_v37 = vpop.permute.xlu0 %331 }
  0xae   : > { %v336_v38 = vsel %vm335_vm5, %v332_v37, %v334_v36  ;;  %v337_v39 = vsel %vm335_vm5, %v334_v36, %v332_v37  ;;  %662 = vmatpush1.msk.msra.mxu0 %vm431_vm4, %v424_v35 }
  0xaf   : > { %v340_v40 = vrot.slane %v337_v39, 4  ;;  %v341_v41 = vrot.slane %v336_v38, 4 }
  0xb0   : > { %v401_v51 = vld [vmem:[#allocation2 + $0x28] sm:$0xff] }
  0xb1   : > { %344 = vst [vmem:[#allocation2 + $0x18] sm:$0xf0] %v340_v40  ;;  %345 = vst [vmem:[#allocation2 + $0x10] sm:$0xf0] %v341_v41  ;;  %v310_v44 = vpop.permute.xlu1 %309  ;;  %v308_v45 = vpop.permute.xlu0 %307  ;;  %v400_v56 = vld [vmem:[#allocation2 + $0x48] sm:$0xff]  ;;  %v421_v60 = vmul.f32 %v411_v46, %v401_v51 }
  0xb2   : > { %v312_v47 = vsel %vm311_vm6, %v308_v45, %v310_v44  ;;  %v313_v48 = vsel %vm311_vm6, %v310_v44, %v308_v45  ;;  %v403_v49 = vld [vmem:[#allocation2 + $0x20] sm:$0xff]  ;;  %v402_v50 = vld [vmem:[#allocation2 + $0x8] sm:$0xff]  ;;  %v420_v63 = vmul.f32 %v410_v57, %v400_v56 }
  0xb3   : > { %v316_v52 = vrot.slane %v313_v48, 4  ;;  %v317_v53 = vrot.slane %v312_v47, 4  ;;  %v423_v54 = vmul.f32 %v413_v42, %v403_v49  ;;  %v422_v55 = vmul.f32 %v412_v43, %v402_v50 }
  0xb5   : > { %320 = vst [vmem:[#allocation2 + $0x30] sm:$0xf0] %v316_v52  ;;  %321 = vst [vmem:[#allocation2] sm:$0xf0] %v317_v53  ;;  %v325_v58 = vpop.permute.xlu1 %324  ;;  %462 = vmatprep.subr.mxu0 %v423_v54  ;;  %v323_v59 = vpop.permute.xlu0 %322 }
  0xb6   : > { %v327_v61 = vsel %vm326_vm7, %v323_v59, %v325_v58  ;;  %v328_v62 = vsel %vm326_vm7, %v325_v58, %v323_v59  ;;  %463 = vmatpush1.msra.mxu0 %v422_v55 }
  0xb7   : > { %329 = vst [vmem:[#allocation2 + $0x18] sm:$0xf] %v328_v62  ;;  %330 = vst [vmem:[#allocation2 + $0x10] sm:$0xf] %v327_v61  ;;  %464 = vmatprep.subr.mxu0 %v421_v60 }
  0xb8   : > { %465 = vmatpush1.msra.mxu0 %v420_v63 }
  0xb9   : > { %v299_v0 = vpop.permute.xlu1 %298  ;;  %v297_v1 = vpop.permute.xlu0 %296 }
  0xba   : > { %v303_v2 = vsel %vm302_vm8, %v297_v1, %v299_v0  ;;  %v304_v3 = vsel %vm302_vm8, %v299_v0, %v297_v1 }
  0xbb   : > { %305 = vst [vmem:[#allocation2 + $0x30] sm:$0xf] %v304_v3  ;;  %306 = vst [vmem:[#allocation2] sm:$0xf] %v303_v2 }
  0xbe   : > { %v399_v6 = vld [vmem:[#allocation2 + $0x10] sm:$0xff]  ;;  %v398_v7 = vld [vmem:[#allocation2 + $0x18] sm:$0xff] }
  0xbf   : > { %v419_v8 = vmul.f32 %v409_v4, %v399_v6  ;;  %v418_v10 = vmul.f32 %v408_v5, %v398_v7 }
  0xc1   : > { %466 = vmatprep.subr.mxu0 %v419_v8 }
  0xc2   : > { %467 = vmatpush1.msra.mxu0 %v418_v10  ;;  %v397_v13 = vld [vmem:[#allocation2] sm:$0xff]  ;;  %v396_v14 = vld [vmem:[#allocation2 + $0x30] sm:$0xff] }
  0xc3   : > { %v417_v9 = vmul.f32 %v407_v11, %v397_v13  ;;  %v416_v15 = vmul.f32 %v406_v12, %v396_v14 }
  0xc5   : > { %468 = vmatprep.subr.mxu0 %v417_v9 }
  0xc6   : > { %469 = vmatpush1.msra.mxu0 %v416_v15  ;;  %v513_v17 = vpop.permute.xlu0 %512  ;;  %v521_v20 = vpop.permute.xlu1 %520 }
  0xc7   : > { %663 = vmatmul.mubr.msk.f32.vlgmr.msra.gmra.mxu0 %vm427_vm9, %v426_v16 }
  0xca   : > { %v549_v36 = vpop.permute.xlu1 %548  ;;  %v557_v40 = vpop.permute.xlu0 %556 }
 0x187   : > { %v504_v18 = vpop.f32.mrf.mxu0 }
 0x188   : > { %v515_v19 = vmul.f32 %v513_v17, %v504_v18 }
 0x189   : > { %v506_v21 = vpop.f32.mrf.mxu0 }
 0x18a   : > { %v523_v22 = vadd.f32 %v521_v20, %v515_v19  ;;  %v516_v23 = vmul.f32 %v513_v17, %v506_v21 }
 0x18c   : > { %v664_v24 = vmul.f32 -1.442695, %v523_v22  ;;  %v524_v25 = vadd.f32 %v521_v20, %v516_v23 }
 0x18e   : > { %738 = vpow2.f32 %v664_v24  ;;  %v665_v26 = vmul.f32 -1.442695, %v524_v25 }
 0x190   : > { %740 = vpow2.f32 %v665_v26 }
 0x19b   : > { %v739_v27 = vpop.eup %738 }
 0x19c   : > { %v531_v28 = vadd.f32 1.0, %v739_v27 }
 0x19d   : > { %v741_v29 = vpop.eup %740 }
 0x19e   : > { %v532_v30 = vadd.f32 1.0, %v741_v29  ;;  %742 = vrcp.f32 %v531_v28 }
 0x1a0   : > { %744 = vrcp.f32 %v532_v30 }
 0x1ab   : > { %v743_v31 = vpop.eup %742 }
 0x1ac   : > { %v539_v32 = vrot.slane %v743_v31, 4 }
 0x1ad   : > { %v745_v33 = vpop.eup %744 }
 0x1ae   : > { %v540_v34 = vrot.slane %v745_v33, 4  ;;  %v543_v35 = vmul.f32 %v539_v32, %v523_v22 }
 0x1b0   : > { %v544_v37 = vmul.f32 %v540_v34, %v524_v25  ;;  %v551_v38 = vmul.f32 %v549_v36, %v543_v35 }
 0x1b2   : > { %v552_v39 = vmul.f32 %v549_v36, %v544_v37  ;;  %v559_v41 = vadd.f32 %v557_v40, %v551_v38 }
 0x1b4   : > { %v560_v42 = vadd.f32 %v557_v40, %v552_v39 }
 0x1b6   : > { %v563_v43 = vcombine.low %v559_v41, %v560_v42 }
 0x1b8   : > { %565 = vst [vmem:[%s286_s19] sm:$0xff] %v563_v43 }
 0x1b9   : > { %785 = shalt.err (!%p782_p0)
}
 0x1ba   : > { %s786_s14 = scalar_lea.hbm %s579_s23, 128  ;;  %s790_s17 = scalar_lea.hbm %s1037_s7, 256 }
 0x1bb   : > { %p787_p1 = scmp.ne.s32.totalorder %s579_s23, %s786_s14  ;;  %p791_p4 = scmp.lt.s32.totalorder %s579_s23, %s1037_s7 }
 0x1bc   : > { %p792_p7 = scmp.lt.s32.totalorder %s790_s17, %s786_s14 }
 0x1bd   : > { %p788_p2 = pnand %p787_p1, %p930_p5 }
 0x1be   : > { %p793_p8 = por %p792_p7, %p791_p4 }
 0x1bf   : > { %p789_p3 = pneg %p788_p2 }
 0x1c1   : > { %p794_p6 = pnand %p793_p8, %p789_p3 }
 0x1c3   : > { %797 = shalt.err (!%p794_p6)
}
 0x1c4   : > { %677 = dma.vmem_to_hbm [thread:$0]  (%p930_p5), %s582_s20, 128, %s579_s23, %s567_s29  }
 0x1c5 PF: > { %p689_p9 = scmp.ge.s32.totalorder %s836_s27, 2  ;;  %s593_s21 = sand.u32 1, %s824_s24  }
 0x1c6   : > { %p1041_p10 = scmp.ne.s32.totalorder %s1039_s12, 0  ;;  %s594_s22 = scalar_lea.sflag [#allocation5], %s593_s21 }
 0x1c8   : > { %p684_p11 = pnand %p689_p9, %p1041_p10 }
 0x1ca   : > { %p685_p12 = pneg %p684_p11 }
 0x1cc   : > { %819 = dma.done.wait (%p685_p12), %s594_s22, 128  }
 0x1cd   : > { %821 = vsyncadd (%p685_p12), %s594_s22, 4294967168  ;;  %p18_p13 = scmp.ge.s32.totalorder %s917_s30, 4   ;;  %s1042_s24 = smov %s828_s25 }
 0x1ce   : > { %s1043_s25 = smov %s832_s26  ;;  %s1044_s26 = smov %s928_s10 }
 0x1cf   : > { %s1045_s27 = smov %s917_s30  ;;  %20 = sbr.rel (!%p18_p13) target bundleno = 4 (0x4), region = 88 }
 0x1d4   :  { %599 = vsyncpa [#allocation4], 1 }
 0x1d5   :  { %601 = vsyncpa [#allocation4 + $0x1], 1 }
 0x1d6   :  { %602 = vsyncpa [#allocation5], 1 }
 0x1d7   :  { %604 = vsyncpa [#allocation5 + $0x1], 1 }

</bundles_post_ra>
